<compile_context>
chip_gen: v5e
topology: v5e:2x2
jax: 0.10.0
libtpu: 0.0.40
codegen_flags: <defaults>
</compile_context>

<pallas_src>
import functools
import math

import jax
import jax.numpy as jnp
from jax.experimental import pallas as pl
from jax.experimental.pallas import tpu as pltpu


def _layer_norm_kernel(x_ref, gb_ref, o_ref, *, eps, affine_low):
    # x_ref: (TM, H) tile; gb_ref: (2, H) = [gamma; beta]; normalize over last axis.
    x = x_ref[...].astype(jnp.float32)
    h = x.shape[-1]
    inv_h = jnp.float32(1.0 / h)

    # Two-pass mean / variance (biased, matching PyTorch LayerNorm), f32.
    mean = jnp.sum(x, axis=-1, keepdims=True) * inv_h
    xc = x - mean
    var = jnp.sum(xc * xc, axis=-1, keepdims=True) * inv_h
    inv = jax.lax.rsqrt(var + jnp.float32(eps))
    xhat = xc * inv

    gb = gb_ref[...]
    gamma = gb[0:1, :]
    beta = gb[1:2, :]
    if affine_low:
        # bf16 I/O: do the affine in the narrow dtype (halves two VPU passes).
        y = xhat.astype(o_ref.dtype) * gamma + beta
    else:
        y = xhat * gamma.astype(jnp.float32) + beta.astype(jnp.float32)
    o_ref[...] = y.astype(o_ref.dtype)


def _sublane_pack(dtype) -> int:
    itemsize = jnp.dtype(dtype).itemsize
    if itemsize >= 4:
        return 8
    if itemsize == 2:
        return 16
    return 32


def layer_norm(x, gamma, beta, eps=1e-6, row_tile=None):
    """LayerNorm over the last dimension. x: (..., H). gamma, beta: (H,)."""
    orig_shape = x.shape
    H = orig_shape[-1]
    rows = int(math.prod(orig_shape[:-1])) if len(orig_shape) > 1 else 1

    x2 = x.reshape(rows, H)
    gb = jnp.stack([gamma.reshape(H), beta.reshape(H)])  # (2, H), one DMA stream

    dtype = jnp.dtype(x.dtype)
    itemsize = dtype.itemsize
    pack = _sublane_pack(dtype)
    rows_ceil = pl.cdiv(rows, pack) * pack

    # --- Tile sizing: a few MiB already saturates HBM; stay small. ---
    if row_tile is None:
        tm = 1024
    else:
        tm = int(row_tile)
    tm = min(tm, 1024)
    # Cap the per-buffer tile at ~4 MiB of f32-equivalent footprint.
    max_rows_by_bytes = (4 << 20) // max(H * 4, 1)
    if max_rows_by_bytes >= pack:
        tm = min(tm, max_rows_by_bytes)
    tm = max(pack, (tm // pack) * pack)
    tm = min(tm, rows_ceil)
    # Guarantee >= 2 grid steps when the row count allows (v7x megacore: both
    # TensorCores get work; harmless on single-TC v5e/v6e).
    if rows_ceil >= 2 * pack:
        tm = min(tm, max(pack, ((rows_ceil // 2) // pack) * pack))

    grid_rows = pl.cdiv(rows, tm)  # partial last block handled by Pallas

    # --- Explicit VMEM limit: working set + slack, 64 MiB ceiling (v7x-safe). ---
    tile_bytes = tm * H * itemsize
    f32_tile = tm * H * 4
    param_bytes = 2 * H * jnp.dtype(gb.dtype).itemsize
    needed = 4 * tile_bytes + 3 * f32_tile + 2 * param_bytes + (8 << 20)
    vmem_limit = int(max(32 << 20, min(needed, 64 << 20)))

    affine_low = dtype == jnp.bfloat16 and jnp.dtype(gb.dtype) == jnp.bfloat16
    kernel = functools.partial(_layer_norm_kernel, eps=eps, affine_low=affine_low)

    out = pl.pallas_call(
        kernel,
        out_shape=jax.ShapeDtypeStruct((rows, H), x.dtype),
        grid_spec=pltpu.PrefetchScalarGridSpec(
            num_scalar_prefetch=0,
            grid=(grid_rows,),
            in_specs=[
                pl.BlockSpec((tm, H), lambda i: (i, 0)),
                pl.BlockSpec((2, H), lambda i: (0, 0)),
            ],
            out_specs=pl.BlockSpec((tm, H), lambda i: (i, 0)),
        ),
        compiler_params=pltpu.CompilerParams(
            dimension_semantics=("parallel",),
            vmem_limit_bytes=vmem_limit,
        ),
    )(x2, gb)

    return out.reshape(orig_shape)


def _ref_layer_norm(x, gamma, beta, eps=1e-6):
    xf = x.astype(jnp.float32)
    mean = jnp.mean(xf, axis=-1, keepdims=True)
    var = jnp.mean((xf - mean) ** 2, axis=-1, keepdims=True)
    return (xf - mean) * jax.lax.rsqrt(var + eps) * gamma.astype(jnp.float32) + beta.astype(jnp.float32)


if __name__ == "__main__":
    key = jax.random.PRNGKey(0)
    B, S, H = 2, 8, 32  # normalized_shape = H

    kx, kg, kb = jax.random.split(key, 3)
    x = jax.random.normal(kx, (B, S, H), dtype=jnp.float32)
    # nn.LayerNorm default init is weight=1, bias=0; perturb slightly so the
    # affine path is actually exercised.
    gamma = jnp.ones((H,), jnp.float32) + 0.1 * jax.random.normal(kg, (H,), jnp.float32)
    beta = 0.1 * jax.random.normal(kb, (H,), jnp.float32)

    y = jax.block_until_ready(layer_norm(x, gamma, beta, eps=1e-6))
    ref = _ref_layer_norm(x, gamma, beta)
    assert jnp.allclose(y, ref, atol=1e-5, rtol=1e-5), "mismatch vs reference"

    # Ragged row count (partial last block, no padding / slicing outside kernel).
    x_odd = jax.random.normal(kx, (3, 5, H), dtype=jnp.float32)
    y_odd = jax.block_until_ready(layer_norm(x_odd, gamma, beta, eps=1e-6))
    ref_odd = _ref_layer_norm(x_odd, gamma, beta)
    assert jnp.allclose(y_odd, ref_odd, atol=1e-5, rtol=1e-5), "mismatch (ragged path)"

    # bf16 I/O path (affine in bf16, stats in f32).
    x_bf = x.astype(jnp.bfloat16)
    y_bf = jax.block_until_ready(
        layer_norm(x_bf, gamma.astype(jnp.bfloat16), beta.astype(jnp.bfloat16), eps=1e-6)
    )
    ref_bf = _ref_layer_norm(x_bf, gamma.astype(jnp.bfloat16), beta.astype(jnp.bfloat16))
    assert jnp.allclose(y_bf.astype(jnp.float32), ref_bf, atol=3e-2, rtol=3e-2), "mismatch (bf16 path)"

    print("KERNEL_OK")
</pallas_src>

<mosaic_0001>
module attributes {stable_mosaic.version = 11 : i64} {
  func.func @_layer_norm_kernel(%arg0: i32, %arg1: memref<8x32xf32, #tpu.memory_space<vmem>>, %arg2: memref<2x32xf32, #tpu.memory_space<vmem>>, %arg3: memref<8x32xf32, #tpu.memory_space<vmem>>) attributes {dimension_semantics = [#tpu.dimension_semantics<parallel>], iteration_bounds = array<i64: 2>, scalar_prefetch = 0 : i64, scratch_operands = 0 : i64, tpu.core_type = #tpu.core_type<tc>, window_params = [{transform_indices = @transform_0, window_bounds = array<i64: 8, 32>}, {pipeline_mode = #tpu.pipeline_mode<synchronous>, transform_indices = @transform_1, window_bounds = array<i64: 2, 32>}, {transform_indices = @transform_2, window_bounds = array<i64: 8, 32>}]} {
    %c0 = arith.constant 0 : index
    %c0_0 = arith.constant 0 : index
    %0 = vector.load %arg1[%c0, %c0_0] : memref<8x32xf32, #tpu.memory_space<vmem>>, vector<8x32xf32>
    %cst = arith.constant dense<0.000000e+00> : vector<8xf32>
    %1 = vector.multi_reduction <add>, %0, %cst [1] : vector<8x32xf32> to vector<8xf32>
    %2 = vector.shape_cast %1 : vector<8xf32> to vector<8x1xf32>
    %cst_1 = arith.constant 3.125000e-02 : f32
    %3 = vector.broadcast %cst_1 : f32 to vector<8x1xf32>
    %4 = arith.mulf %2, %3 : vector<8x1xf32>
    %5 = vector.broadcast %4 : vector<8x1xf32> to vector<8x32xf32>
    %6 = arith.subf %0, %5 : vector<8x32xf32>
    %7 = arith.mulf %6, %6 : vector<8x32xf32>
    %cst_2 = arith.constant dense<0.000000e+00> : vector<8xf32>
    %8 = vector.multi_reduction <add>, %7, %cst_2 [1] : vector<8x32xf32> to vector<8xf32>
    %9 = vector.shape_cast %8 : vector<8xf32> to vector<8x1xf32>
    %cst_3 = arith.constant 3.125000e-02 : f32
    %10 = vector.broadcast %cst_3 : f32 to vector<8x1xf32>
    %11 = arith.mulf %9, %10 : vector<8x1xf32>
    %cst_4 = arith.constant 9.99999997E-7 : f32
    %12 = vector.broadcast %cst_4 : f32 to vector<8x1xf32>
    %13 = arith.addf %11, %12 : vector<8x1xf32>
    %14 = math.rsqrt %13 : vector<8x1xf32>
    %15 = vector.broadcast %14 : vector<8x1xf32> to vector<8x32xf32>
    %16 = arith.mulf %6, %15 : vector<8x32xf32>
    %c0_5 = arith.constant 0 : index
    %c0_6 = arith.constant 0 : index
    %17 = vector.load %arg2[%c0_5, %c0_6] : memref<2x32xf32, #tpu.memory_space<vmem>>, vector<2x32xf32>
    %18 = vector.extract_strided_slice %17 {offsets = [0, 0], sizes = [1, 32], strides = [1, 1]} : vector<2x32xf32> to vector<1x32xf32>
    %19 = vector.extract_strided_slice %17 {offsets = [1, 0], sizes = [1, 32], strides = [1, 1]} : vector<2x32xf32> to vector<1x32xf32>
    %20 = vector.broadcast %18 : vector<1x32xf32> to vector<8x32xf32>
    %21 = arith.mulf %16, %20 : vector<8x32xf32>
    %22 = vector.broadcast %19 : vector<1x32xf32> to vector<8x32xf32>
    %23 = arith.addf %21, %22 : vector<8x32xf32>
    %c0_7 = arith.constant 0 : index
    %c0_8 = arith.constant 0 : index
    %24 = vector.load %arg3[%c0_7, %c0_8] : memref<8x32xf32, #tpu.memory_space<vmem>>, vector<8x32xf32>
    tpu.vector_store %arg3[%c0_7, %c0_8], %23 {strides = array<i32>} : memref<8x32xf32, #tpu.memory_space<vmem>>, vector<8x32xf32>,
    return
  }
  func.func @transform_0(%arg0: i32) -> (i32, i32) {
    %c0_i32 = arith.constant 0 : i32
    %c0_i32_0 = arith.constant 0 : i32
    return %arg0, %c0_i32 : i32, i32
  }
  func.func @transform_1(%arg0: i32) -> (i32, i32) {
    %c0_i32 = arith.constant 0 : i32
    %c0_i32_0 = arith.constant 0 : i32
    %c0_i32_1 = arith.constant 0 : i32
    return %c0_i32, %c0_i32_0 : i32, i32
  }
  func.func @transform_2(%arg0: i32) -> (i32, i32) {
    %c0_i32 = arith.constant 0 : i32
    %c0_i32_0 = arith.constant 0 : i32
    return %arg0, %c0_i32 : i32, i32
  }
}

</mosaic_0001>

<bundles_post_ra>
// kernel: tpu_custom_call.1
= control target key start
LH: loop header
LB: loop body
LE: loop exit
PB: predicated region body
PF: predicated region fallthrough
CT: control target
= control target key end

     0   :  { %7 = vsyncpa [#allocation3], 0  ;;  %s668_s0 = inlined_call_operand.hbm [shape: f32[16,32], index: 0, kind: input, shape index: {}]   ;;  %s669_s1 = inlined_call_operand.hbm [shape: f32[2,32], index: 1, kind: input, shape index: {}]   ;;  %s670_s2 = inlined_call_operand.hbm [shape: f32[16,32], index: 2, kind: output, shape index: {}]  }
   0x1   :  { %9 = vsyncpa [#allocation3 + $0x1], 0 }
   0x2   :  { %10 = vsyncpa [#allocation6], 0 }
   0x3   :  { %11 = vsyncpa [#allocation4], 0 }
   0x4   :  { %13 = vsyncpa [#allocation4 + $0x1], 0  ;;  %s523_s9 = smov 0   ;;  %s525_s10 = smov 0  }
   0x5   :  { %s527_s11 = smov 0   ;;  %s529_s12 = smov 0  }
   0x6 LB: > { %s544_s13 = sadd.s32 4294967295, %s505_s12   ;;  %s302_s14 = sadd.s32 4294967294, %s505_s12   ;;  %s505_s12 = sphi %s529_s12, %s680_s12   ;;  %s501_s11 = sphi %s527_s11, %s679_s11   ;;  %s497_s10 = sphi %s525_s10, %s678_s10   ;;  %s493_s9 = sphi %s523_s9, %s677_s9  }
   0x7   : > { %p39_p0 = scmp.ne.s32.totalorder %s497_s10, %s493_s9  ;;  %p40_p1 = scmp.eq.s32.totalorder %s544_s13, 0 }
   0x8   : > { %p84_p2 = scmp.eq.s32.totalorder %s544_s13, 1  ;;  %p90_p3 = scmp.eq.s32.totalorder %s302_s14, 1 }
   0x9   : > { %p553_p4 = por %p40_p1, %p39_p0  ;;  %p303_p5 = scmp.ge.s32.totalorder %s505_s12, 1 }
   0xa   : > { %p558_p6 = por %p90_p3, %p39_p0  ;;  %p97_p7 = scmp.lt.s32.totalorder %s505_s12, 3 }
   0xb   : > { %s109_s19 = sshll.u32 %s669_s1, 4  ;;  %s507_s21 = smov [#allocation5]   ;;  %s110_s19 = int_to_ptr.hbm [resolvable:$true] %s109_s19 }
   0xc   : > { %p566_p8 = pnand %p303_p5, %p97_p7  ;;  %s111_s22 = sshll.u32 %s507_s21, 4  ;;  %s112_s22 = int_to_ptr.vmem [resolvable:$true] %s111_s22 }
   0xd   : > { %s576_s23 = sadd.s32 1, %s505_s12   ;;  %s26_s24 = sadd.s32 1, %s501_s11 }
   0xe   : > { %p324_p10 = pneg %p566_p8  ;;  %s23_s25 = ssub.s32 %s505_s12, %s576_s23 }
   0xf   : > { %p24_p12 = scmp.eq.s32.totalorder %s23_s25, 0  ;;  %p33_p13 = scmp.ne.s32.totalorder %s501_s11, %s497_s10 }
  0x10   : > { %p325_p11 = pnand %p324_p10, %p40_p1  ;;  %p34_p0 = scmp.eq.s32.totalorder %s505_s12, 0 }
  0x11   : > { %s585_s26 = scalar_select %p24_p12, %s501_s11, %s26_s24  }
  0x12   : > { %327 = dma.hbm_to_vmem [thread:$0]  (!%p325_p11), %s110_s19, 32, %s112_s22, [#allocation6]  }
  0x13   : > { %p589_p3 = por %p84_p2, %p33_p13  ;;  %p337_p5 = scmp.lt.s32.totalorder %s505_s12, 2 }
  0x14   : > { %s122_s28 = sand.u32 1, %s501_s11   ;;  %s307_s29 = sshll.u32 %s505_s12, 3 }
  0x15   : > { %p35_p7 = por %p34_p0, %p33_p13  ;;  %s306_s30 = sshll.u32 %s122_s28, 3 }
  0x16   : > { %s130_s5 = scalar_lea.hbm %s668_s0, %s307_s29  ;;  %s126_s7 = scalar_lea.vmem [#allocation2], %s306_s30 }
  0x17   : > { %s132_s6 = sshll.u32 %s130_s5, 4  ;;  %s134_s8 = sshll.u32 %s126_s7, 4  ;;  %s133_s6 = int_to_ptr.hbm [resolvable:$true] %s132_s6  ;;  %s135_s8 = int_to_ptr.vmem [resolvable:$true] %s134_s8 }
  0x18   : > { %p599_p10 = pnand %p337_p5, %p35_p7  ;;  %s123_s17 = scalar_lea.sflag [#allocation3], %s122_s28 }
  0x19   : > { %s405_s18 = sshra.s32 %s133_s6, 4  ;;  %s412_s24 = scalar_lea.hbm %s668_s0, 16  ;;  %s406_s18 = int_to_ptr.hbm [resolvable:$true] %s405_s18 }
  0x1a   : > { %s407_s19 = scalar_lea.hbm %s406_s18, 8  ;;  %p409_p11 = pneg %p599_p10 }
  0x1b   : > { %p408_p2 = scmp.ne.s32.totalorder %s406_s18, %s407_s19  ;;  %p413_p0 = scmp.lt.s32.totalorder %s406_s18, %s668_s0 }
  0x1c   : > { %p414_p5 = scmp.lt.s32.totalorder %s412_s24, %s407_s19 }
  0x1d   : > { %p410_p12 = pnand %p409_p11, %p408_p2 }
  0x1e   : > { %p415_p7 = por %p414_p5, %p413_p0 }
  0x1f   : > { %p411_p13 = pneg %p410_p12 }
  0x21   : > { %p416_p9 = pnand %p415_p7, %p411_p13 }
  0x23   : > { %419 = shalt.err (!%p416_p9)
}
  0x24   : > { %331 = dma.hbm_to_vmem [thread:$0]  (!%p599_p10), %s133_s6, 128, %s135_s8, %s123_s17  }
  0x25   : > { %143 = sbr.rel (%p566_p8) target bundleno = 317 (0x13d), region = 28  ;;  %s616_s28 = sand.u32 (!%p566_p8), 1, %s497_s10  }
  0x26   : > { %s309_s30 = sshll.u32 (!%p566_p8), %s616_s28, 3  ;;  %s146_s3 = scalar_lea.sflag (!%p566_p8), [#allocation3], %s616_s28 }
  0x27   : > { %s149_s4 = scalar_lea.vmem (!%p566_p8), [#allocation2], %s309_s30 }
  0x2a   : > { %480 = dma.done.wait (%p553_p4), %s146_s3, 128  }
  0x2b   : > { %482 = vsyncadd (%p553_p4), %s146_s3, 4294967168 }
  0x2c   : > { %484 = dma.done.wait (%p40_p1), [#allocation6], 32  }
  0x2d   : > { %486 = vsyncadd (%p40_p1), [#allocation6], 4294967264  ;;  %vm177_vm0 = vcmask 261120   ;;  %v176_v0 = vld [vmem:[%s149_s4] sm:$0xff]  ;;  %v200_v14 = vld [vmem:[#allocation5] sm:$0x3] }
  0x2e   : > { %v178_v1 = vsel %vm177_vm0, %v176_v0, 0.0  ;;  %s313_s15 = sshll.u32 %s544_s13, 3  ;;  %v201_v17 = vperm.slane %v200_v14, 0  ;;  %v203_v19 = vperm.slane %v200_v14, 1  ;;  %s175_s7 = scalar_lea.vmem [#allocation7], %s309_s30 }
  0x2f   : > { %179 = vadd.xlane.f32.xlu0 %v178_v1  ;;  %s217_s6 = scalar_lea.hbm %s670_s2, %s313_s15  ;;  %s219_s8 = sshll.u32 %s175_s7, 4  ;;  %s220_s8 = int_to_ptr.vmem [resolvable:$true] %s219_s8 }
  0x30   : > { %s221_s14 = sshll.u32 %s217_s6, 4  ;;  %s207_s13 = scalar_lea.sflag [#allocation4], %s616_s28  ;;  %s222_s14 = int_to_ptr.hbm [resolvable:$true] %s221_s14 }
  0x31   : > { %s449_s17 = sshra.s32 %s222_s14, 4  ;;  %s455_s22 = scalar_lea.hbm %s670_s2, 16  ;;  %s450_s17 = int_to_ptr.hbm [resolvable:$true] %s449_s17 }
  0x32   : > { %s451_s18 = scalar_lea.hbm %s450_s17, 8  ;;  %p456_p9 = scmp.lt.s32.totalorder %s450_s17, %s670_s2 }
  0x33   : > { %p452_p1 = scmp.ne.s32.totalorder %s450_s17, %s451_s18  ;;  %p457_p10 = scmp.lt.s32.totalorder %s455_s22, %s451_s18 }
  0x35   : > { %p453_p4 = pnand %p452_p1, %p589_p3  ;;  %p458_p2 = por %p457_p10, %p456_p9 }
  0x37   : > { %p454_p8 = pneg %p453_p4 }
  0x39   : > { %p459_p11 = pnand %p458_p2, %p454_p8 }
  0xa2   : > { %v180_v2 = vpop.xlane.xlu0 %179 }
  0xa3   : > { %v181_v3 = vmul.f32 0.03125, %v180_v2 }
  0xa5   : > { %v182_v4 = vsub.f32 %v176_v0, %v181_v3 }
  0xa7   : > { %v183_v5 = vmul.f32 %v182_v4, %v182_v4 }
  0xa9   : > { %v184_v6 = vsel %vm177_vm0, %v183_v5, 0.0 }
  0xaa   : > { %185 = vadd.xlane.f32.xlu0 %v184_v6 }
 0x11d   : > { %v186_v7 = vpop.xlane.xlu0 %185 }
 0x11e   : > { %v187_v8 = vmul.f32 0.03125, %v186_v7 }
 0x120   : > { %v188_v9 = vadd.f32 1e-06, %v187_v8 }
 0x122   : > { %373 = vrsqrt.f32 %v188_v9  ;;  %vm195_vm2 = vweird.f32 %v188_v9 }
 0x128   : > { %v374_v10 = vpop.eup %373 }
 0x129   : > { %v190_v11 = vmul.f32 %v374_v10, %v188_v9  ;;  %vm196_vm1 = vweird.f32 %v374_v10 }
 0x12a   : > { %vm197_vm3 = vmor %vm195_vm2, %vm196_vm1 }
 0x12b   : > { %v191_v12 = vmul.f32 %v374_v10, %v190_v11 }
 0x12d   : > { %v192_v13 = vmul.f32 0.5, %v191_v12 }
 0x12f   : > { %v193_v15 = vsub.f32 1.5, %v192_v13 }
 0x131   : > { %v194_v16 = vmul.f32 %v374_v10, %v193_v15 }
 0x133   : > { %v198_v18 = vsel %vm197_vm3, %v374_v10, %v194_v16 }
 0x134   : > { %v199_v20 = vmul.f32 %v198_v18, %v182_v4 }
 0x136   : > { %v202_v21 = vmul.f32 %v201_v17, %v199_v20 }
 0x138   : > { %v204_v22 = vadd.f32 %v203_v19, %v202_v21 }
 0x13a   : > { %205 = vst.msk [vmem:[%s175_s7] sm:$0xff] %vm177_vm0, %v204_v22 }
 0x13b   : > { %462 = shalt.err (!%p459_p11)
}
 0x13c   : > { %322 = dma.vmem_to_hbm [thread:$0]  (%p589_p3), %s220_s8, 128, %s222_s14, %s207_s13  }
 0x13d PF: > { %s233_s29 = sand.u32 1, %s493_s9   ;;  %p676_p12 = scmp.ge.s32.totalorder %s505_s12, 2 }
 0x13e   : > { %s234_s28 = scalar_lea.sflag [#allocation4], %s233_s29 }
 0x13f   : > { %p333_p13 = pnand %p676_p12, %p558_p6 }
 0x141   : > { %p334_p0 = pneg %p333_p13 }
 0x143   : > { %488 = dma.done.wait (%p334_p0), %s234_s28, 128  }
 0x144   : > { %490 = vsyncadd (%p334_p0), %s234_s28, 4294967168  ;;  %p16_p5 = scmp.ge.s32.totalorder %s576_s23, 4   ;;  %s677_s9 = smov %s497_s10 }
 0x145   : > { %s678_s10 = smov %s501_s11  ;;  %s679_s11 = smov %s585_s26 }
 0x146   : > { %s680_s12 = smov %s576_s23  ;;  %18 = sbr.rel (!%p16_p5) target bundleno = 6 (0x6), region = 77 }
 0x14b   :  { %240 = vsyncpa [#allocation3], 1 }
 0x14c   :  { %242 = vsyncpa [#allocation3 + $0x1], 1 }
 0x14d   :  { %243 = vsyncpa [#allocation6], 1 }
 0x14e   :  { %244 = vsyncpa [#allocation4], 1 }
 0x14f   :  { %246 = vsyncpa [#allocation4 + $0x1], 1 }

</bundles_post_ra>
